<compile_context>
chip_gen: v7x
topology: tpu7x:2x2x1
jax: 0.10.0
libtpu: 0.0.40
codegen_flags: <defaults>
</compile_context>

<pallas_src>
import jax
import jax.numpy as jnp
from jax.experimental import pallas as pl
from jax.experimental.pallas import tpu as pltpu

_LANE = 128
_SUBLANE = 8
_VMEM_TILE_BUDGET = 12 * 1024 * 1024  # target for the double-buffered working set


def _round_up(x, m):
    return ((x + m - 1) // m) * m


def _rowsum_to_lanes(masked):
    """Row-sum of a one-hot-masked (rows, C) f32 array, returned lane-major (1, rows).

    Contracts ones(8, C) @ masked^T on the MXU so the per-row scalars land
    along lanes (no sublane->lane relayout / transpose).  The f32 operand is
    split into three exact bf16 pieces so the result is ~f32-exact regardless
    of the default matmul precision; only one term per row is nonzero, so the
    accumulation itself is exact.
    """
    rows, c = masked.shape
    ones_rows = jnp.ones((_SUBLANE, c), dtype=jnp.bfloat16)  # M=8 keeps the MXU path happy

    def _contract(piece_bf16):
        return jax.lax.dot_general(
            ones_rows, piece_bf16,
            dimension_numbers=(((1,), (1,)), ((), ())),
            preferred_element_type=jnp.float32)              # (8, rows), rows identical

    hi = masked.astype(jnp.bfloat16)
    r1 = masked - hi.astype(jnp.float32)
    mid = r1.astype(jnp.bfloat16)
    lo = (r1 - mid.astype(jnp.float32)).astype(jnp.bfloat16)

    g8 = _contract(hi) + _contract(mid) + _contract(lo)      # (8, rows)
    return g8[0:1, :]                                        # (1, rows), lane-major


def _dynamic_weights_kernel(thr_ref, out_ref, tgt_ref, w_ref):
    # thr_ref: (1,)          f32 SMEM  (threshold)
    # out_ref: (tile_n, C)   f32 VMEM  (row-tile of `outputs`)
    # tgt_ref: (tile_n, 1)   i32 VMEM
    # w_ref:   (2, tile_n)   f32 VMEM  (lane-dense; row0 = 1-0.8w, row1 = 0.8w)
    o = out_ref[...]                                          # (tile_n, C)
    t = tgt_ref[...]                                          # (tile_n, 1)
    _, c = o.shape

    # One-hot select of outputs[i, targets[i]].
    cls_ids = jax.lax.broadcasted_iota(jnp.int32, (1, c), 1)  # (1, C)
    masked = jnp.where(cls_ids == t, o, 0.0)                  # (tile_n, C)

    gathered = _rowsum_to_lanes(masked)                       # (1, tile_n) lane-major
    w = gathered / thr_ref[0]                                 # exact division by threshold
    soft = 0.8 * w                                            # (1, tile_n)

    # Single lane-dense store of both streams: row 0 = 1-0.8w, row 1 = 0.8w.
    row_id = jax.lax.broadcasted_iota(jnp.int32, (2, 1), 0)   # (2, 1)
    w_ref[...] = jnp.where(row_id == 1, soft, 1.0 - soft)     # (2, tile_n)


def _choose_tile_n(n, c):
    """Row-tile size with corrected (lane/sublane padded) VMEM accounting."""
    c_pad = _round_up(max(int(c), 1), _LANE)
    # Double-buffered bytes per row: outputs + lane-padded targets + out block.
    per_row_db = 2 * (4 * c_pad + 4 * _LANE + 4 * _SUBLANE)
    rows = (_VMEM_TILE_BUDGET // per_row_db) // _LANE * _LANE
    rows = max(_LANE, min(rows, 4096))
    # Keep >= 2 grid steps when N allows it (v7x megacore sharding).
    rows = min(rows, max(_LANE, _round_up(pl.cdiv(int(n), 2), _LANE)))
    return rows, per_row_db


def calculate_dynamic_weights(outputs, targets, n_test, threshold):
    """outputs: (n_test, C) float; targets: (n_test,) int; threshold: scalar.

    Returns (1 - 0.8*w, 0.8*w), each shaped (n_test,), where
    w[i] = outputs[i, targets[i]] / threshold.
    """
    outputs = jnp.asarray(outputs, jnp.float32)
    targets = jnp.asarray(targets, jnp.int32)
    n, c = outputs.shape
    assert n == n_test

    tile_n, per_row_db = _choose_tile_n(n, c)
    grid = (pl.cdiv(n, tile_n),)
    tgt2d = targets.reshape(n, 1)
    thr = jnp.asarray([threshold], dtype=jnp.float32)

    # Explicit scoped-VMEM limit: covers the double-buffered tiles with slack,
    # stays under v7x's 64 MiB physical VMEM.
    vmem_limit = int(min(max(per_row_db * tile_n * 5 // 4, 32 * 1024 * 1024),
                         56 * 1024 * 1024))

    packed = pl.pallas_call(
        _dynamic_weights_kernel,
        out_shape=jax.ShapeDtypeStruct((2, n), jnp.float32),
        grid_spec=pltpu.PrefetchScalarGridSpec(
            num_scalar_prefetch=0,
            grid=grid,
            in_specs=[
                pl.BlockSpec(memory_space=pltpu.SMEM),            # threshold
                pl.BlockSpec((tile_n, c), lambda i: (i, 0)),      # outputs tile
                pl.BlockSpec((tile_n, 1), lambda i: (i, 0)),      # targets tile
            ],
            out_specs=pl.BlockSpec((2, tile_n), lambda i: (0, i)),
        ),
        compiler_params=pltpu.CompilerParams(
            dimension_semantics=("parallel",),   # megacore sharding on v7x
            vmem_limit_bytes=vmem_limit,
        ),
    )(thr, outputs, tgt2d)

    return packed[0, :], packed[1, :]


def _check(n_test, num_classes, threshold, key):
    k1, k2 = jax.random.split(key)
    logits = jax.random.normal(k1, (n_test, num_classes), dtype=jnp.float32)
    outputs = jax.nn.softmax(logits, axis=-1)
    targets = jax.random.randint(k2, (n_test,), 0, num_classes, dtype=jnp.int32)

    w_hard, w_soft = calculate_dynamic_weights(outputs, targets, n_test, threshold)
    jax.block_until_ready((w_hard, w_soft))

    gathered = outputs[jnp.arange(n_test), targets] / threshold
    ref_hard = 1.0 - 0.8 * gathered
    ref_soft = 0.8 * gathered
    assert w_hard.shape == (n_test,) and w_soft.shape == (n_test,)
    assert jnp.allclose(w_hard, ref_hard, atol=1e-6, rtol=1e-6), (w_hard, ref_hard)
    assert jnp.allclose(w_soft, ref_soft, atol=1e-6, rtol=1e-6), (w_soft, ref_soft)


if __name__ == "__main__":
    key = jax.random.PRNGKey(0)
    k1, k2 = jax.random.split(key)

    # Small case: single partial block (N=10 < tile_n=128).
    _check(n_test=10, num_classes=32, threshold=0.5, key=k1)
    # Multi-step grid case: 2 grid steps with a partial tail block.
    _check(n_test=300, num_classes=40, threshold=0.5, key=k2)

    print("KERNEL_OK")
</pallas_src>

<mosaic_0001>
module attributes {stable_mosaic.version = 11 : i64} {
  func.func @_dynamic_weights_kernel(%arg0: i32, %arg1: memref<1xf32, #tpu.memory_space<smem>>, %arg2: memref<128x32xf32, #tpu.memory_space<vmem>>, %arg3: memref<128x1xi32, #tpu.memory_space<vmem>>, %arg4: memref<2x128xf32, #tpu.memory_space<vmem>>) attributes {dimension_semantics = [#tpu.dimension_semantics<parallel>], iteration_bounds = array<i64: 1>, scalar_prefetch = 0 : i64, scratch_operands = 0 : i64, tpu.core_type = #tpu.core_type<tc>, window_params = [{transform_indices = @transform_0, window_bounds = array<i64: 1>}, {transform_indices = @transform_1, window_bounds = array<i64: 128, 32>}, {transform_indices = @transform_2, window_bounds = array<i64: 128, 1>}, {transform_indices = @transform_3, window_bounds = array<i64: 2, 128>}]} {
    %c0 = arith.constant 0 : index
    %c0_0 = arith.constant 0 : index
    %0 = vector.load %arg2[%c0, %c0_0] : memref<128x32xf32, #tpu.memory_space<vmem>>, vector<128x32xf32>
    %c0_1 = arith.constant 0 : index
    %c0_2 = arith.constant 0 : index
    %1 = vector.load %arg3[%c0_1, %c0_2] : memref<128x1xi32, #tpu.memory_space<vmem>>, vector<128x1xi32>
    %2 = tpu.iota {dimensions = array<i32: 1>} : vector<1x32xi32>
    %3 = vector.broadcast %2 : vector<1x32xi32> to vector<128x32xi32>
    %4 = vector.broadcast %1 : vector<128x1xi32> to vector<128x32xi32>
    %5 = arith.cmpi eq, %3, %4 : vector<128x32xi32>
    %cst = arith.constant 0.000000e+00 : f32
    %6 = vector.broadcast %cst : f32 to vector<128x32xf32>
    %7 = arith.select %5, %0, %6 : vector<128x32xi1>, vector<128x32xf32>
    %cst_3 = arith.constant 1.000000e+00 : bf16
    %8 = vector.broadcast %cst_3 : bf16 to vector<8x32xbf16>
    %9 = arith.truncf %7 : vector<128x32xf32> to vector<128x32xbf16>
    %10 = arith.extf %9 : vector<128x32xbf16> to vector<128x32xf32>
    %11 = arith.subf %7, %10 : vector<128x32xf32>
    %12 = arith.truncf %11 : vector<128x32xf32> to vector<128x32xbf16>
    %13 = arith.extf %12 : vector<128x32xbf16> to vector<128x32xf32>
    %14 = arith.subf %11, %13 : vector<128x32xf32>
    %15 = arith.truncf %14 : vector<128x32xf32> to vector<128x32xbf16>
    %cst_4 = arith.constant dense<0.000000e+00> : vector<8x128xf32>
    %16 = tpu.matmul %8, %9, %cst_4 {dimension_numbers = #tpu.dot_dimension_numbers<[1], [1], [0], [0], [0, 0, 1, 0], [], []>} : vector<8x32xbf16>, vector<128x32xbf16>, vector<8x128xf32> -> vector<8x128xf32>
    %cst_5 = arith.constant dense<0.000000e+00> : vector<8x128xf32>
    %17 = tpu.matmul %8, %12, %cst_5 {dimension_numbers = #tpu.dot_dimension_numbers<[1], [1], [0], [0], [0, 0, 1, 0], [], []>} : vector<8x32xbf16>, vector<128x32xbf16>, vector<8x128xf32> -> vector<8x128xf32>
    %18 = arith.addf %16, %17 : vector<8x128xf32>
    %cst_6 = arith.constant dense<0.000000e+00> : vector<8x128xf32>
    %19 = tpu.matmul %8, %15, %cst_6 {dimension_numbers = #tpu.dot_dimension_numbers<[1], [1], [0], [0], [0, 0, 1, 0], [], []>} : vector<8x32xbf16>, vector<128x32xbf16>, vector<8x128xf32> -> vector<8x128xf32>
    %20 = arith.addf %18, %19 : vector<8x128xf32>
    %21 = vector.extract_strided_slice %20 {offsets = [0, 0], sizes = [1, 128], strides = [1, 1]} : vector<8x128xf32> to vector<1x128xf32>
    %c0_7 = arith.constant 0 : index
    %22 = memref.load %arg1[%c0_7] : memref<1xf32, #tpu.memory_space<smem>>
    %23 = vector.broadcast %22 : f32 to vector<1x128xf32>
    %24 = arith.divf %21, %23 : vector<1x128xf32>
    %cst_8 = arith.constant 8.000000e-01 : f32
    %25 = vector.broadcast %cst_8 : f32 to vector<1x128xf32>
    %26 = arith.mulf %25, %24 : vector<1x128xf32>
    %27 = tpu.iota {dimensions = array<i32: 0>} : vector<2x1xi32>
    %c1_i32 = arith.constant 1 : i32
    %28 = vector.broadcast %c1_i32 : i32 to vector<2x1xi32>
    %29 = arith.cmpi eq, %27, %28 : vector<2x1xi32>
    %cst_9 = arith.constant 1.000000e+00 : f32
    %30 = vector.broadcast %cst_9 : f32 to vector<1x128xf32>
    %31 = arith.subf %30, %26 : vector<1x128xf32>
    %32 = vector.shape_cast %29 : vector<2x1xi1> to vector<2x1xi1>
    %33 = vector.broadcast %32 : vector<2x1xi1> to vector<2x128xi1>
    %34 = vector.shape_cast %26 : vector<1x128xf32> to vector<1x128xf32>
    %35 = vector.broadcast %34 : vector<1x128xf32> to vector<2x128xf32>
    %36 = vector.shape_cast %31 : vector<1x128xf32> to vector<1x128xf32>
    %37 = vector.broadcast %36 : vector<1x128xf32> to vector<2x128xf32>
    %38 = arith.select %33, %35, %37 : vector<2x128xi1>, vector<2x128xf32>
    %c0_10 = arith.constant 0 : index
    %c0_11 = arith.constant 0 : index
    %39 = vector.load %arg4[%c0_10, %c0_11] : memref<2x128xf32, #tpu.memory_space<vmem>>, vector<2x128xf32>
    tpu.vector_store %arg4[%c0_10, %c0_11], %38 {strides = array<i32>} : memref<2x128xf32, #tpu.memory_space<vmem>>, vector<2x128xf32>,
    return
  }
  func.func @transform_0(%arg0: i32) -> i32 {
    %c0_i32 = arith.constant 0 : i32
    %c0_i32_0 = arith.constant 0 : i32
    return %c0_i32 : i32
  }
  func.func @transform_1(%arg0: i32) -> (i32, i32) {
    %c0_i32 = arith.constant 0 : i32
    %c0_i32_0 = arith.constant 0 : i32
    return %arg0, %c0_i32 : i32, i32
  }
  func.func @transform_2(%arg0: i32) -> (i32, i32) {
    %c0_i32 = arith.constant 0 : i32
    %c0_i32_0 = arith.constant 0 : i32
    return %arg0, %c0_i32 : i32, i32
  }
  func.func @transform_3(%arg0: i32) -> (i32, i32) {
    %c0_i32 = arith.constant 0 : i32
    %c0_i32_0 = arith.constant 0 : i32
    return %c0_i32, %arg0 : i32, i32
  }
}

</mosaic_0001>

<bundles_post_ra>
// kernel: tpu_custom_call.1
= control target key start
LH: loop header
LB: loop body
LE: loop exit
PB: predicated region body
PF: predicated region fallthrough
CT: control target
= control target key end

     0   :  { %v580_v2 = vmov 0   ;;  %s892_s0 = inlined_call_operand.<no memory space> [shape: f32[1], index: 0, kind: input, shape index: {}]   ;;  %s893_s1 = inlined_call_operand.vmem [shape: f32[10,32], index: 1, kind: input, shape index: {}]   ;;  %s894_s2 = inlined_call_operand.vmem [shape: s32[10,1], index: 2, kind: input, shape index: {}]   ;;  %s895_s3 = inlined_call_operand.hbm [shape: f32[2,10], index: 3, kind: output, shape index: {}]  }
   0x1   :  { %v36_v0 = vld [vmem:[%s894_s2 + $0x10] sm:$0xff]  ;;  %v34_v1 = vld [vmem:[%s894_s2] sm:$0xff]  ;;  %553 = vset.pattern.permute.xlu1 %v580_v2  ;;  %552 = vset.pattern.permute.xlu0 %v580_v2  ;;  %v37_v3 = vld [vmem:[%s894_s2 + $0x18] sm:$0xff] }
   0x2   :  { %59 = vperm.xlu1 %553, %v36_v0   ;;  %53 = vperm.xlu0 %552, %v34_v1   ;;  %v35_v4 = vld [vmem:[%s894_s2 + $0x8] sm:$0xff] }
   0x6   :  { %62 = vperm.xlu1 %553, %v37_v3   ;;  %56 = vperm.xlu0 %552, %v35_v4  }
   0x7   :  { %9 = vsyncpa [#allocation4], 0  ;;  %v39_v5 = vld [vmem:[%s894_s2 + $0x28] sm:$0xff]  ;;  %v38_v6 = vld [vmem:[%s894_s2 + $0x20] sm:$0xff]  ;;  %v581_v9 = vmov 0.0   ;;  %vm582_vm0 = vmmov 0   ;;  %v50_v18 = vlaneseq }
   0x8   :  { %v41_v7 = vld [vmem:[%s894_s2 + $0x38] sm:$0xff]  ;;  %v40_v8 = vld [vmem:[%s894_s2 + $0x30] sm:$0xff]  ;;  %502 = vmatprep.subr.bf16.mxu0 %v581_v9  ;;  %482 = vmatprep.subr.bf16.mxu1 %v581_v9  ;;  %v43_v10 = vld [vmem:[%s894_s2 + $0x48] sm:$0xff]  ;;  %vm220_vm5 = vcmask 261120   ;;  %s584_s21 = smov [#allocation3]  }
   0x9   :  { %v42_v11 = vld [vmem:[%s894_s2 + $0x40] sm:$0xff]  ;;  %v45_v12 = vld [vmem:[%s894_s2 + $0x58] sm:$0xff]  ;;  %v44_v13 = vld [vmem:[%s894_s2 + $0x50] sm:$0xff]  ;;  %518 = vmatprep.mubr.msk.bf16.mxu0 %vm582_vm0, %v581_v9  ;;  %498 = vmatprep.mubr.msk.bf16.mxu1 %vm582_vm0, %v581_v9  ;;  %v660_v19 = vand.u32 127, %v50_v18  ;;  %s444_s22 = sshll.u32 %s584_s21, 4  ;;  %s445_s22 = int_to_ptr.vmem [resolvable:$true] %s444_s22 }
   0xa   :  { %68 = vperm.xlu1 %553, %v39_v5   ;;  %65 = vperm.xlu0 %552, %v38_v6   ;;  %v47_v14 = vld [vmem:[%s894_s2 + $0x68] sm:$0xff]  ;;  %v46_v15 = vld [vmem:[%s894_s2 + $0x60] sm:$0xff]  ;;  %v49_v16 = vld [vmem:[%s894_s2 + $0x78] sm:$0xff]  ;;  %p561_p1 = scmp.lt.s32.totalorder %s445_s22, %s445_s22 }
   0xb   :  { %v48_v17 = vld [vmem:[%s894_s2 + $0x70] sm:$0xff]  ;;  %v18_v23 = vld [vmem:[%s893_s1] sm:$0xff]  ;;  %v21_v24 = vld [vmem:[%s893_s1 + $0x18] sm:$0xff] }
   0xc   :  { %v20_v22 = vld [vmem:[%s893_s1 + $0x10] sm:$0xff]  ;;  %v19_v25 = vld [vmem:[%s893_s1 + $0x8] sm:$0xff]  ;;  %v22_v39 = vld [vmem:[%s893_s1 + $0x20] sm:$0xff] }
   0xd   :  { %v23_v38 = vld [vmem:[%s893_s1 + $0x28] sm:$0xff]  ;;  %v25_v54 = vld [vmem:[%s893_s1 + $0x38] sm:$0xff]  ;;  %v24_v55 = vld [vmem:[%s893_s1 + $0x30] sm:$0xff] }
   0xe   :  { %74 = vperm.xlu1 %553, %v41_v7   ;;  %71 = vperm.xlu0 %552, %v40_v8   ;;  %v27_v4 = vld [vmem:[%s893_s1 + $0x48] sm:$0xff]  ;;  %v26_v5 = vld [vmem:[%s893_s1 + $0x40] sm:$0xff] }
  0x12   :  { %80 = vperm.xlu1 %553, %v43_v10   ;;  %77 = vperm.xlu0 %552, %v42_v11  }
  0x16   :  { %86 = vperm.xlu1 %553, %v45_v12   ;;  %83 = vperm.xlu0 %552, %v44_v13  }
  0x1a   :  { %92 = vperm.xlu1 %553, %v47_v14   ;;  %89 = vperm.xlu0 %552, %v46_v15  }
  0x1e   :  { %98 = vperm.xlu1 %553, %v49_v16   ;;  %95 = vperm.xlu0 %552, %v48_v17  }
  0x81   :  { %v60_v20 = vpop.permute.xlu1 %59  ;;  %v54_v21 = vpop.permute.xlu0 %53 }
  0x82   :  { %vm102_vm1 = vcmp.eq.s32.totalorder %v660_v19, %v60_v20  ;;  %vm100_vm2 = vcmp.eq.s32.totalorder %v660_v19, %v54_v21  ;;  %v29_v21 = vld [vmem:[%s893_s1 + $0x58] sm:$0xff] }
  0x83   :  { %v118_v28 = vsel %vm102_vm1, %v20_v22, 0.0  ;;  %v116_v29 = vsel %vm100_vm2, %v18_v23, 0.0  ;;  %v28_v22 = vld [vmem:[%s893_s1 + $0x50] sm:$0xff] }
  0x85   :  { %v63_v26 = vpop.permute.xlu1 %62  ;;  %v57_v27 = vpop.permute.xlu0 %56 }
  0x86   :  { %vm103_vm3 = vcmp.eq.s32.totalorder %v660_v19, %v63_v26  ;;  %vm101_vm4 = vcmp.eq.s32.totalorder %v660_v19, %v57_v27 }
  0x87   :  { %v119_v30 = vsel %vm103_vm3, %v21_v24, 0.0  ;;  %v117_v31 = vsel %vm101_vm4, %v19_v25, 0.0 }
  0x88   :  { %v132_v32 = vpack.c.bf16 %v117_v31, %v116_v29  ;;  %v133_v33 = vpack.c.bf16 %v119_v30, %v118_v28 }
  0x89   :  { %v69_v34 = vpop.permute.xlu1 %68  ;;  %v66_v35 = vpop.permute.xlu0 %65 }
  0x8a   :  { %v140_v36 = vunpack.c.l.bf16 %v132_v32  ;;  %v141_v37 = vunpack.c.h.bf16 %v132_v32  ;;  %vm105_vm6 = vcmp.eq.s32.totalorder %v660_v19, %v69_v34  ;;  %vm104_vm7 = vcmp.eq.s32.totalorder %v660_v19, %v66_v35  ;;  %v31_v35 = vld [vmem:[%s893_s1 + $0x68] sm:$0xff] }
  0x8b   :  { %v289_v40 = vsel %vm220_vm5, %v132_v32, 0  ;;  %v142_v43 = vunpack.c.l.bf16 %v133_v33  ;;  %v143_v44 = vunpack.c.h.bf16 %v133_v33  ;;  %v121_v46 = vsel %vm105_vm6, %v23_v38, 0.0 }
  0x8c   :  { %v687_v41 = vsub.f32 %v116_v29, %v140_v36  ;;  %v689_v42 = vsub.f32 %v117_v31, %v141_v37  ;;  %503 = vmatpush3.bf16.xpose.msra.mxu0 %v289_v40  ;;  %v120_v47 = vsel %vm104_vm7, %v22_v39, 0.0  ;;  %v292_v56 = vsel %vm220_vm5, %v133_v33, 0  ;;  %v30_v36 = vld [vmem:[%s893_s1 + $0x60] sm:$0xff] }
  0x8d   :  { %504 = vmatprep.subr.bf16.mxu0 %v581_v9  ;;  %v75_v48 = vpop.permute.xlu1 %74  ;;  %v72_v49 = vpop.permute.xlu0 %71  ;;  %v696_v50 = vsub.f32 %v118_v28, %v142_v43  ;;  %v698_v51 = vsub.f32 %v119_v30, %v143_v44  ;;  %v134_v52 = vpack.c.bf16 %v121_v46, %v120_v47 }
  0x8e   :  { %v694_v45 = vpack.c.bf16 %v689_v42, %v687_v41  ;;  %vm107_vm8 = vcmp.eq.s32.totalorder %v660_v19, %v75_v48  ;;  %vm106_vm9 = vcmp.eq.s32.totalorder %v660_v19, %v72_v49 }
  0x8f   :  { %v714_v57 = vpack.c.bf16 %v698_v51, %v696_v50  ;;  %v144_v58 = vunpack.c.l.bf16 %v134_v52  ;;  %v145_v59 = vunpack.c.h.bf16 %v134_v52  ;;  %v123_v60 = vsel %vm107_vm8, %v25_v54, 0.0  ;;  %v33_v54 = vld [vmem:[%s893_s1 + $0x78] sm:$0xff] }
  0x90   :  { %v225_v53 = vsel %vm220_vm5, %v694_v45, 0  ;;  %v122_v61 = vsel %vm106_vm9, %v24_v55, 0.0  ;;  %v295_v6 = vsel %vm220_vm5, %v134_v52, 0  ;;  %v32_v55 = vld [vmem:[%s893_s1 + $0x70] sm:$0xff] }
  0x91   :  { %483 = vmatpush3.bf16.xpose.msra.mxu1 %v225_v53  ;;  %v81_v62 = vpop.permute.xlu1 %80  ;;  %v78_v63 = vpop.permute.xlu0 %77  ;;  %v717_v0 = vsub.f32 %v120_v47, %v144_v58  ;;  %v719_v1 = vsub.f32 %v121_v46, %v145_v59  ;;  %v135_v2 = vpack.c.bf16 %v123_v60, %v122_v61  ;;  %v228_v3 = vsel %vm220_vm5, %v714_v57, 0 }
  0x92   :  { %484 = vmatprep.subr.bf16.mxu1 %v581_v9  ;;  %vm109_vm10 = vcmp.eq.s32.totalorder %v660_v19, %v81_v62  ;;  %vm108_vm11 = vcmp.eq.s32.totalorder %v660_v19, %v78_v63 }
  0x93   :  { %v735_v7 = vpack.c.bf16 %v719_v1, %v717_v0  ;;  %v146_v8 = vunpack.c.l.bf16 %v135_v2  ;;  %v147_v10 = vunpack.c.h.bf16 %v135_v2  ;;  %v125_v11 = vsel %vm109_vm10, %v27_v4, 0.0 }
  0x94   :  { %505 = vmatpush3.bf16.xpose.msra.mxu0 %v292_v56  ;;  %v124_v12 = vsel %vm108_vm11, %v26_v5, 0.0  ;;  %v298_v23 = vsel %vm220_vm5, %v135_v2, 0 }
  0x95   :  { %506 = vmatprep.subr.bf16.mxu0 %v581_v9  ;;  %v87_v13 = vpop.permute.xlu1 %86  ;;  %v84_v14 = vpop.permute.xlu0 %83  ;;  %v738_v15 = vsub.f32 %v122_v61, %v146_v8  ;;  %v740_v16 = vsub.f32 %v123_v60, %v147_v10  ;;  %v136_v17 = vpack.c.bf16 %v125_v11, %v124_v12  ;;  %v231_v20 = vsel %vm220_vm5, %v735_v7, 0 }
  0x96   :  { %vm111_vm12 = vcmp.eq.s32.totalorder %v660_v19, %v87_v13  ;;  %vm110_vm13 = vcmp.eq.s32.totalorder %v660_v19, %v84_v14  ;;  %v180_v10 = vunpack.c.l.bf16 %v694_v45 }
  0x97   :  { %v756_v24 = vpack.c.bf16 %v740_v16, %v738_v15  ;;  %v148_v25 = vunpack.c.l.bf16 %v136_v17  ;;  %v149_v26 = vunpack.c.h.bf16 %v136_v17  ;;  %v127_v27 = vsel %vm111_vm12, %v29_v21, 0.0 }
  0x98   :  { %v126_v28 = vsel %vm110_vm13, %v28_v22, 0.0  ;;  %v301_v37 = vsel %vm220_vm5, %v136_v17, 0  ;;  %v196_v21 = vsub.f32 %v687_v41, %v180_v10  ;;  %v182_v22 = vunpack.c.l.bf16 %v714_v57 }
  0x99   :  { %485 = vmatpush3.bf16.xpose.msra.mxu1 %v228_v3  ;;  %v93_v29 = vpop.permute.xlu1 %92  ;;  %v90_v30 = vpop.permute.xlu0 %89  ;;  %v759_v31 = vsub.f32 %v124_v12, %v148_v25  ;;  %v761_v32 = vsub.f32 %v125_v11, %v149_v26  ;;  %v137_v33 = vpack.c.bf16 %v127_v27, %v126_v28  ;;  %v234_v34 = vsel %vm220_vm5, %v756_v24, 0 }
  0x9a   :  { %486 = vmatprep.subr.bf16.mxu1 %v581_v9  ;;  %vm113_vm14 = vcmp.eq.s32.totalorder %v660_v19, %v93_v29  ;;  %vm112_vm15 = vcmp.eq.s32.totalorder %v660_v19, %v90_v30  ;;  %v181_v11 = vunpack.c.h.bf16 %v694_v45  ;;  %v185_v29 = vunpack.c.h.bf16 %v735_v7 }
  0x9b   :  { %v777_v38 = vpack.c.bf16 %v761_v32, %v759_v31  ;;  %v150_v39 = vunpack.c.l.bf16 %v137_v33  ;;  %v151_v40 = vunpack.c.h.bf16 %v137_v33  ;;  %v129_v43 = vsel %vm113_vm14, %v31_v35, 0.0 }
  0x9c   :  { %507 = vmatpush3.bf16.xpose.msra.mxu0 %v295_v6  ;;  %v128_v44 = vsel %vm112_vm15, %v30_v36, 0.0  ;;  %v304_v56 = vsel %vm220_vm5, %v137_v33, 0  ;;  %v197_v17 = vsub.f32 %v689_v42, %v181_v11  ;;  %v187_v35 = vunpack.c.h.bf16 %v756_v24 }
  0x9d   :  { %508 = vmatprep.subr.bf16.mxu0 %v581_v9  ;;  %v99_v46 = vpop.permute.xlu1 %98  ;;  %v96_v47 = vpop.permute.xlu0 %95  ;;  %v780_v48 = vsub.f32 %v126_v28, %v150_v39  ;;  %v782_v49 = vsub.f32 %v127_v27, %v151_v40  ;;  %v138_v52 = vpack.c.bf16 %v129_v43, %v128_v44  ;;  %v237_v53 = vsel %vm220_vm5, %v777_v38, 0 }
  0x9e   :  { %vm115_vm1 = vcmp.eq.s32.totalorder %v660_v19, %v99_v46  ;;  %vm114_vm2 = vcmp.eq.s32.totalorder %v660_v19, %v96_v47  ;;  %v212_v25 = vpack.c.bf16 %v197_v17, %v196_v21  ;;  %v583_v27 = vmov 1065369472  }
  0x9f   :  { %v798_v58 = vpack.c.bf16 %v782_v49, %v780_v48  ;;  %v152_v59 = vunpack.c.l.bf16 %v138_v52  ;;  %v153_v60 = vunpack.c.h.bf16 %v138_v52  ;;  %v131_v61 = vsel %vm115_vm1, %v33_v54, 0.0 }
  0xa0   :  { %v130_v62 = vsel %vm114_vm2, %v32_v55, 0.0  ;;  %v307_v4 = vsel %vm220_vm5, %v138_v52, 0  ;;  %v353_v41 = vsel %vm220_vm5, %v212_v25, 0  ;;  %v198_v28 = vsub.f32 %v696_v50, %v182_v22 }
  0xa1   :  { %487 = vmatpush3.bf16.xpose.msra.mxu1 %v231_v20  ;;  %v801_v63 = vsub.f32 %v128_v44, %v152_v59  ;;  %v803_v2 = vsub.f32 %v129_v43, %v153_v60  ;;  %v139_v19 = vpack.c.bf16 %v131_v61, %v130_v62  ;;  %v240_v3 = vsel %vm220_vm5, %v798_v58, 0 }
  0xa2   :  { %488 = vmatprep.subr.bf16.mxu1 %v581_v9  ;;  %v186_v50 = vunpack.c.l.bf16 %v756_v24  ;;  %v203_v39 = vsub.f32 %v740_v16, %v187_v35  ;;  %v191_v16 = vunpack.c.h.bf16 %v798_v58 }
  0xa3   :  { %v811_v5 = vpack.c.bf16 %v803_v2, %v801_v63  ;;  %v154_v6 = vunpack.c.l.bf16 %v139_v19  ;;  %v155_v8 = vunpack.c.h.bf16 %v139_v19  ;;  %v310_v20 = vsel %vm220_vm5, %v139_v19, 0 }
  0xa4   :  { %509 = vmatpush3.bf16.xpose.msra.mxu0 %v298_v23  ;;  %v183_v23 = vunpack.c.h.bf16 %v714_v57  ;;  %v184_v57 = vunpack.c.l.bf16 %v735_v7 }
  0xa5   :  { %510 = vmatprep.subr.bf16.mxu0 %v581_v9  ;;  %v816_v12 = vsub.f32 %v130_v62, %v154_v6  ;;  %v818_v13 = vsub.f32 %v131_v61, %v155_v8  ;;  %v243_v14 = vsel %vm220_vm5, %v811_v5, 0 }
  0xa6   :  { %v199_v42 = vsub.f32 %v698_v51, %v183_v23  ;;  %v200_v51 = vsub.f32 %v717_v0, %v184_v57  ;;  %v188_v0 = vunpack.c.l.bf16 %v777_v38 }
  0xa7   :  { %v179_v45 = vpack.c.bf16 %v818_v13, %v816_v12 }
  0xa8   :  { %v213_v30 = vpack.c.bf16 %v199_v42, %v198_v28  ;;  %v204_v43 = vsub.f32 %v759_v31, %v188_v0  ;;  %v192_v31 = vunpack.c.l.bf16 %v811_v5 }
  0xa9   :  { %489 = vmatpush3.bf16.xpose.msra.mxu1 %v234_v34  ;;  %v246_v26 = vsel %vm220_vm5, %v179_v45, 0  ;;  %v201_v34 = vsub.f32 %v719_v1, %v185_v29  ;;  %v189_v1 = vunpack.c.h.bf16 %v777_v38  ;;  %v207_v38 = vsub.f32 %v782_v49, %v191_v16 }
  0xaa   :  { %490 = vmatprep.subr.bf16.mxu1 %v581_v9  ;;  %v356_v33 = vsel %vm220_vm5, %v213_v30, 0  ;;  %v208_v54 = vsub.f32 %v801_v63, %v192_v31 }
  0xab   :  { %v214_v36 = vpack.c.bf16 %v201_v34, %v200_v51  ;;  %v205_v24 = vsub.f32 %v761_v32, %v189_v1  ;;  %v193_v32 = vunpack.c.h.bf16 %v811_v5  ;;  %v418_v5 = vstv %s892_s0  ;;  %s556_s0 = scalar_lea.vmem %s445_s22, 32 }
  0xac   :  { %511 = vmatpush3.bf16.xpose.msra.mxu0 %v301_v37  ;;  %v202_v37 = vsub.f32 %v738_v15, %v186_v50  ;;  %v190_v15 = vunpack.c.l.bf16 %v798_v58  ;;  %v195_v58 = vunpack.c.h.bf16 %v179_v45  ;;  %554 = vrcp.f32 %v418_v5  ;;  %p557_p0 = scmp.ne.s32.totalorder %s445_s22, %s556_s0  ;;  %p562_p2 = scmp.lt.s32.totalorder %s556_s0, %s556_s0 }
  0xad   :  { %512 = vmatprep.subr.bf16.mxu0 %v581_v9  ;;  %v359_v7 = vsel %vm220_vm5, %v214_v36, 0  ;;  %v216_v46 = vpack.c.bf16 %v205_v24, %v204_v43 }
  0xae   :  { %v215_v40 = vpack.c.bf16 %v203_v39, %v202_v37  ;;  %v206_v47 = vsub.f32 %v780_v48, %v190_v15  ;;  %v194_v48 = vunpack.c.l.bf16 %v179_v45  ;;  %v211_v61 = vsub.f32 %v818_v13, %v195_v58  ;;  %p563_p3 = por %p562_p2, %p561_p1 }
  0xaf   :  { %v365_v52 = vsel %vm220_vm5, %v216_v46, 0 }
  0xb0   :  { %v362_v44 = vsel %vm220_vm5, %v215_v40, 0  ;;  %v210_v59 = vsub.f32 %v816_v12, %v194_v48  ;;  %p564_p4 = pnand %p563_p3, %p557_p0 }
  0xb1   :  { %491 = vmatpush3.bf16.xpose.msra.mxu1 %v237_v53  ;;  %v217_v53 = vpack.c.bf16 %v207_v38, %v206_v47 }
  0xb2   :  { %492 = vmatprep.subr.bf16.mxu1 %v581_v9  ;;  %v219_v62 = vpack.c.bf16 %v211_v61, %v210_v59 }
  0xb3   :  { %v368_v55 = vsel %vm220_vm5, %v217_v53, 0 }
  0xb4   :  { %513 = vmatpush3.bf16.xpose.msra.mxu0 %v304_v56  ;;  %v209_v56 = vsub.f32 %v803_v2, %v193_v32  ;;  %v374_v63 = vsel %vm220_vm5, %v219_v62, 0 }
  0xb5   :  { %514 = vmatprep.subr.bf16.mxu0 %v581_v9 }
  0xb6   :  { %v218_v49 = vpack.c.bf16 %v209_v56, %v208_v54  ;;  %v555_v6 = vpop.eup %554 }
  0xb8   :  { %v371_v60 = vsel %vm220_vm5, %v218_v49, 0 }
  0xb9   :  { %493 = vmatpush3.bf16.xpose.msra.mxu1 %v240_v3 }
  0xba   :  { %494 = vmatprep.subr.bf16.mxu1 %v581_v9 }
  0xbc   :  { %515 = vmatpush3.bf16.xpose.msra.mxu0 %v307_v4 }
  0xbd   :  { %516 = vmatprep.subr.bf16.mxu0 %v581_v9 }
  0xc1   :  { %495 = vmatpush3.bf16.xpose.msra.mxu1 %v243_v14 }
  0xc2   :  { %496 = vmatprep.subr.bf16.mxu1 %v581_v9 }
  0xc4   :  { %517 = vmatpush3.bf16.xpose.msra.mxu0 %v310_v20 }
  0xc5   :  { %522 = vmatprep.subr.bf16.mxu0 %v581_v9 }
  0xc9   :  { %497 = vmatpush3.bf16.xpose.msra.mxu1 %v246_v26 }
  0xcb   :  { %519 = vmatmul.mubr.msk.bf16.vlgmr.msra.gmra.mrb[0].mxu0 %vm220_vm5, %v583_v27 }
  0xcc   :  { %523 = vmatpush3.bf16.xpose.msra.mxu0 %v353_v41  ;;  %538 = vmatprep.mubr.msk.bf16.mxu0 %vm582_vm0, %v581_v9 }
  0xcd   :  { %524 = vmatprep.subr.bf16.mxu0 %v581_v9 }
  0xd0   :  { %499 = vmatmul.mubr.msk.bf16.vlgmr.msra.gmra.mrb[0].mxu1 %vm220_vm5, %v583_v27 }
  0xd4   :  { %525 = vmatpush3.bf16.xpose.msra.mxu0 %v356_v33 }
  0xd5   :  { %526 = vmatprep.subr.bf16.mxu0 %v581_v9 }
  0xdc   :  { %527 = vmatpush3.bf16.xpose.msra.mxu0 %v359_v7 }
  0xdd   :  { %528 = vmatprep.subr.bf16.mxu0 %v581_v9 }
  0xe4   :  { %529 = vmatpush3.bf16.xpose.msra.mxu0 %v362_v44 }
  0xe5   :  { %530 = vmatprep.subr.bf16.mxu0 %v581_v9 }
  0xec   :  { %531 = vmatpush3.bf16.xpose.msra.mxu0 %v365_v52 }
  0xed   :  { %532 = vmatprep.subr.bf16.mxu0 %v581_v9 }
  0xf4   :  { %533 = vmatpush3.bf16.xpose.msra.mxu0 %v368_v55 }
  0xf5   :  { %534 = vmatprep.subr.bf16.mxu0 %v581_v9 }
  0xfc   :  { %535 = vmatpush3.bf16.xpose.msra.mxu0 %v371_v60 }
  0xfd   :  { %536 = vmatprep.subr.bf16.mxu0 %v581_v9  ;;  %v423_v9 = vshrl.u32 %v50_v18, 7 }
  0xff   :  { %v430_v20 = vsub.s32 0, %v423_v9  ;;  %vm424_vm0 = vcmp.eq.s32.totalorder %v423_v9, 1 }
 0x104   :  { %537 = vmatpush3.bf16.xpose.msra.mxu0 %v374_v63 }
 0x10b   :  { %539 = vmatmul.mubr.msk.bf16.vlgmr.msra.gmra.mrb[0].mxu0 %vm220_vm5, %v583_v27 }
 0x1a3   :  { %v282_v2 = vpop.f32.mrb[0].mxu1 }
 0x1a4   :  { %v500_v19 = vpop.f32.mrb[1].mxu1 }
 0x1a5   :  { %v285_v3 = vpop.f32.mrb[2].mxu1 }
 0x1a6   :  { %v501_v4 = vpop.f32.mrb[3].mxu1 }
 0x1de   :  { %v410_v8 = vpop.f32.mrb[0].mxu0 }
 0x1df   :  { %v542_v10 = vadd.f32 %v410_v8, %v282_v2  ;;  %v540_v11 = vpop.f32.mrb[1].mxu0 }
 0x1e0   :  { %v413_v12 = vpop.f32.mrb[2].mxu0 }
 0x1e1   :  { %v420_v13 = vmul.f32 %v555_v6, %v542_v10  ;;  %v541_v14 = vpop.f32.mrb[3].mxu0 }
 0x1e3   :  { %v421_v17 = vmul.f32 0.8, %v420_v13 }
 0x1e5   :  { %v425_v21 = vsub.f32 1.0, %v421_v17  ;;  %v431_v45 = vrot.slane %v421_v17, %v430_v20 }
 0x1e7   :  { %v435_v22 = vrot.slane %v425_v21, %v430_v20 }
 0x1e9   :  { %v436_v23 = vsel %vm424_vm0, %v431_v45, %v435_v22 }
 0x1ea   :  { %437 = vst [vmem:[#allocation3] sm:$0x3] %v436_v23 }
 0x1eb   :  { %567 = shalt.err (!%p564_p4)
}
 0x1ec   :  { %s568_s25 = scalar_lea.hbm %s895_s3, 32 }
 0x1ed   :  { %p569_p5 = scmp.ne.s32.totalorder %s895_s3, %s568_s25  ;;  %p572_p6 = scmp.lt.u32.totalorder %s568_s25, %s895_s3 }
 0x1ef   :  { %p574_p7 = pnand %p572_p6, %p569_p5 }
 0x1f1   :  { %577 = shalt.err (!%p574_p7)
}
 0x1f2   :  { %447 = dma.vmem_to_hbm [thread:$0]  %s445_s22, 32, %s895_s3, [#allocation4]  }
 0x1f3   :  { %578 = dma.done.wait [#allocation4], 32  }
 0x1f4   :  { %579 = vsyncadd [#allocation4], 4294967264 }
 0x1f5   :  { %451 = vsyncpa [#allocation4], 1 }

</bundles_post_ra>
